<compile_context>
chip_gen: v7x
topology: tpu7x:2x2x1
jax: 0.10.0
libtpu: 0.0.40
codegen_flags: <defaults>
</compile_context>

<pallas_src>
import jax
import jax.numpy as jnp
from jax.experimental import pallas as pl

EPS = 1e-3  # matches nn.BatchNorm1d(..., eps=0.001) in the PyTorch module


def _temporal_mixing_kernel(x_ref, w_ref, b_ref, o_ref):
    # x_ref: (B, N*L)    raw permuted input, lane-dense
    # w_ref: (N*L, N*L)  block-diagonal Linear weight with BN scale folded in
    # b_ref: (1, N*L)    Linear bias with BN shift folded in
    x2d = x_ref[...]
    y = jnp.dot(x2d, w_ref[...], preferred_element_type=jnp.float32)
    y = jnp.maximum(y + b_ref[...], 0.0)               # bias + ReLU
    # Dropout is identity in eval; residual add against the original input.
    o_ref[...] = (y + x2d).astype(o_ref.dtype)


def temporal_mixing(inp, w, b, gamma, beta, running_mean, running_var):
    """inp: (B, L, N) = (batch, input_size, n_series), the PyTorch module's convention."""
    B, L, N = inp.shape
    NL = N * L

    # Permute + flatten to the lane-dense (B, N*L) layout (N*L = 128 here).
    x2d = jnp.transpose(inp, (0, 2, 1)).reshape(B, NL)

    # Fold inference-mode BatchNorm into the Linear:
    #   xhat = x*scale + shift
    #   y    = xhat @ W_bd + b_t = x @ (scale[:,None]*W_bd) + (shift @ W_bd + b_t)
    scale = (gamma * jax.lax.rsqrt(running_var + EPS)).astype(jnp.float32)   # (NL,)
    shift = (beta - running_mean * scale).astype(jnp.float32)                # (NL,)

    wt = jnp.transpose(w).astype(jnp.float32)                   # (L_in, L_out) = W^T
    w_bd = jnp.kron(jnp.eye(N, dtype=jnp.float32), wt)          # (NL, NL) block-diagonal
    w_fused = scale[:, None] * w_bd                             # BN scale folded in
    b_fused = (shift @ w_bd + jnp.tile(b.astype(jnp.float32), N)).reshape(1, NL)

    # Single-step kernel: all operands (~70 KiB total) live in VMEM; one MXU pass.
    out2d = pl.pallas_call(
        _temporal_mixing_kernel,
        out_shape=jax.ShapeDtypeStruct((B, NL), inp.dtype),
    )(x2d, w_fused, b_fused)

    # TODO(synk): at production sizes, tile the batch with a ("parallel",) grid
    # (uses both v7x TensorCores), cast activations/weights to bf16 for the MXU
    # on v6e/v7x, keep the block-diag fold only while (N*L)^2 weights are small
    # (budget v7x VMEM at 64 MiB), and fuse these transposes into the kernel to
    # avoid the extra HBM passes.
    return jnp.transpose(out2d.reshape(B, N, L), (0, 2, 1))      # back to (B, L, N)


def _reference(inp, w, b, gamma, beta, running_mean, running_var):
    B, L, N = inp.shape
    x = jnp.transpose(inp, (0, 2, 1)).reshape(B, N * L)
    x = (x - running_mean) / jnp.sqrt(running_var + EPS) * gamma + beta
    x = x.reshape(B, N, L)
    x = jax.nn.relu(jnp.einsum("bnl,ol->bno", x, w) + b)
    x = jnp.transpose(x, (0, 2, 1))
    return x + inp


if __name__ == "__main__":
    batch, input_size, n_series = 4, 16, 8   # B, L, N  ->  N*L = 128 (one lane width)
    key = jax.random.PRNGKey(0)
    k1, k2, k3, k4, k5, k6, k7 = jax.random.split(key, 7)

    inp = jax.random.normal(k1, (batch, input_size, n_series), dtype=jnp.float32)

    # Linear(input_size, input_size)
    w = jax.random.normal(k2, (input_size, input_size), dtype=jnp.float32) * 0.1
    b = jax.random.normal(k3, (input_size,), dtype=jnp.float32) * 0.1

    # BatchNorm1d(n_series * input_size) parameters + running stats
    nf = n_series * input_size
    gamma = 1.0 + 0.1 * jax.random.normal(k4, (nf,), dtype=jnp.float32)
    beta = 0.1 * jax.random.normal(k5, (nf,), dtype=jnp.float32)
    running_mean = 0.1 * jax.random.normal(k6, (nf,), dtype=jnp.float32)
    running_var = 1.0 + 0.1 * jax.random.uniform(k7, (nf,), dtype=jnp.float32)

    out = temporal_mixing(inp, w, b, gamma, beta, running_mean, running_var)
    out = jax.block_until_ready(out)

    ref = _reference(inp, w, b, gamma, beta, running_mean, running_var)
    assert out.shape == inp.shape
    assert jnp.allclose(out, ref, atol=1e-5, rtol=1e-5)
    print("KERNEL_OK")
</pallas_src>

<mosaic_0001>
module attributes {stable_mosaic.version = 11 : i64} {
  func.func @_temporal_mixing_kernel(%arg0: memref<4x128xf32, #tpu.memory_space<vmem>>, %arg1: memref<128x128xf32, #tpu.memory_space<vmem>>, %arg2: memref<1x128xf32, #tpu.memory_space<vmem>>, %arg3: memref<4x128xf32, #tpu.memory_space<vmem>>) attributes {dimension_semantics = [], scalar_prefetch = 0 : i64, scratch_operands = 0 : i64, tpu.core_type = #tpu.core_type<tc>} {
    %c0 = arith.constant 0 : index
    %c0_0 = arith.constant 0 : index
    %0 = vector.load %arg0[%c0, %c0_0] : memref<4x128xf32, #tpu.memory_space<vmem>>, vector<4x128xf32>
    %c0_1 = arith.constant 0 : index
    %c0_2 = arith.constant 0 : index
    %1 = vector.load %arg1[%c0_1, %c0_2] : memref<128x128xf32, #tpu.memory_space<vmem>>, vector<128x128xf32>
    %cst = arith.constant dense<0.000000e+00> : vector<4x128xf32>
    %2 = tpu.matmul %0, %1, %cst {dimension_numbers = #tpu.dot_dimension_numbers<[1], [0], [0], [1], [0, 0, 1, 1], [], []>} : vector<4x128xf32>, vector<128x128xf32>, vector<4x128xf32> -> vector<4x128xf32>
    %c0_3 = arith.constant 0 : index
    %c0_4 = arith.constant 0 : index
    %3 = vector.load %arg2[%c0_3, %c0_4] : memref<1x128xf32, #tpu.memory_space<vmem>>, vector<1x128xf32>
    %4 = vector.broadcast %3 : vector<1x128xf32> to vector<4x128xf32>
    %5 = arith.addf %2, %4 : vector<4x128xf32>
    %cst_5 = arith.constant 0.000000e+00 : f32
    %6 = vector.broadcast %cst_5 : f32 to vector<4x128xf32>
    %7 = arith.maximumf %5, %6 : vector<4x128xf32>
    %8 = arith.addf %7, %0 : vector<4x128xf32>
    %c0_6 = arith.constant 0 : index
    %c0_7 = arith.constant 0 : index
    %9 = vector.load %arg3[%c0_6, %c0_7] : memref<4x128xf32, #tpu.memory_space<vmem>>, vector<4x128xf32>
    tpu.vector_store %arg3[%c0_6, %c0_7], %8 {strides = array<i32>} : memref<4x128xf32, #tpu.memory_space<vmem>>, vector<4x128xf32>,
    return
  }
}

</mosaic_0001>

<bundles_post_ra>
// kernel: tpu_custom_call.1
= control target key start
LH: loop header
LB: loop body
LE: loop exit
PB: predicated region body
PF: predicated region fallthrough
CT: control target
= control target key end

     0   :  { %8 = vsyncpa [#allocation3], 0  ;;  %s385_s0 = inlined_call_operand.hbm [shape: f32[4,128], index: 0, kind: input, shape index: {}]   ;;  %s386_s1 = inlined_call_operand.hbm [shape: f32[128,128], index: 1, kind: input, shape index: {}]   ;;  %s387_s2 = inlined_call_operand.vmem [shape: f32[1,128], index: 2, kind: input, shape index: {}]   ;;  %s388_s3 = inlined_call_operand.hbm [shape: f32[4,128], index: 3, kind: output, shape index: {}]  }
   0x1   :  { %9 = vsyncpa [#allocation6], 0 }
   0x2   :  { %10 = vsyncpa [#allocation4], 0  ;;  %s311_s12 = smov [#allocation2]   ;;  %s312_s14 = smov [#allocation5]  }
   0x3   :  { %s17_s13 = sshll.u32 %s311_s12, 4  ;;  %s26_s15 = sshll.u32 %s312_s14, 4  ;;  %s18_s13 = int_to_ptr.vmem [resolvable:$true] %s17_s13  ;;  %s339_s15 = int_to_ptr.vmem [resolvable:$true] %s26_s15 }
   0x4   :  { %s239_s18 = scalar_lea.hbm %s385_s0, 64 }
   0x5   :  { %p240_p0 = scmp.ne.s32.totalorder %s385_s0, %s239_s18  ;;  %p243_p1 = scmp.lt.u32.totalorder %s239_s18, %s385_s0 }
   0x7   :  { %p245_p2 = pnand %p243_p1, %p240_p0 }
   0x9   :  { %248 = shalt.err (!%p245_p2)
}
   0xa   :  { %s249_s23 = scalar_lea.vmem %s18_s13, 64  ;;  %p254_p4 = scmp.lt.s32.totalorder %s18_s13, %s18_s13 }
   0xb   :  { %p250_p3 = scmp.ne.s32.totalorder %s18_s13, %s249_s23  ;;  %p255_p5 = scmp.lt.s32.totalorder %s249_s23, %s249_s23 }
   0xd   :  { %p256_p6 = por %p255_p5, %p254_p4 }
   0xf   :  { %p257_p7 = pnand %p256_p6, %p250_p3 }
  0x11   :  { %260 = shalt.err (!%p257_p7)
}
  0x12   :  { %20 = dma.hbm_to_vmem [thread:$0]  %s385_s0, 64, %s18_s13, [#allocation3]  }
  0x13   :  { %s261_s28 = scalar_lea.hbm %s386_s1, 2048 }
  0x14   :  { %p262_p8 = scmp.ne.s32.totalorder %s386_s1, %s261_s28  ;;  %p265_p9 = scmp.lt.u32.totalorder %s261_s28, %s386_s1 }
  0x16   :  { %p267_p10 = pnand %p265_p9, %p262_p8 }
  0x18   :  { %270 = shalt.err (!%p267_p10)
}
  0x19   :  { %s271_s6 = scalar_lea.vmem %s339_s15, 2048  ;;  %p276_p12 = scmp.lt.s32.totalorder %s339_s15, %s339_s15 }
  0x1a   :  { %p272_p11 = scmp.ne.s32.totalorder %s339_s15, %s271_s6  ;;  %p277_p13 = scmp.lt.s32.totalorder %s271_s6, %s271_s6 }
  0x1c   :  { %p278_p0 = por %p277_p13, %p276_p12 }
  0x1e   :  { %p279_p1 = pnand %p278_p0, %p272_p11 }
  0x20   :  { %282 = shalt.err (!%p279_p1)
}
  0x21   :  { %s313_s0 = smov 128   ;;  %s314_s7 = smov 8  }
  0x22   :  { %32 = dma.hbm_to_vmem [thread:$0]  %s386_s1, 2048, %s339_s15, [#allocation6], %s313_s0, %s313_s0, %s314_s7  }
  0x23   :  { %305 = dma.done.wait [#allocation3], 64  }
  0x24   :  { %306 = vsyncadd [#allocation3], 4294967232 }
  0x25   :  { %307 = dma.done.wait [#allocation6], 2048  }
  0x26   :  { %308 = vsyncadd [#allocation6], 4294965248  ;;  %v315_v0 = vmov 0.0|0.0   ;;  %vm316_vm0 = vmmov 0   ;;  %v317_v1 = vmov 0.0   ;;  %v42_v2 = vld [vmem:[#allocation5] sm:$0xff] }
  0x27   :  { %207 = vmatprep.subr.bf16.mxu0 %v315_v0  ;;  %204 = vmatprep.mubr.msk.f32.mxu0 %vm316_vm0, %v317_v1  ;;  %v43_v3 = vld [vmem:[#allocation5 + $0x8] sm:$0xff]  ;;  %v44_v4 = vld [vmem:[#allocation5 + $0x10] sm:$0xff]  ;;  %v45_v6 = vld [vmem:[#allocation5 + $0x18] sm:$0xff]  ;;  %s318_s11 = smov [#allocation7]  }
  0x28   :  { %v208_v5 = vpack.c.bf16 %v43_v3, %v42_v2  ;;  %v211_v7 = vpack.c.bf16 %v45_v6, %v44_v4  ;;  %v46_v8 = vld [vmem:[#allocation5 + $0x20] sm:$0xff]  ;;  %v47_v9 = vld [vmem:[#allocation5 + $0x28] sm:$0xff]  ;;  %v48_v11 = vld [vmem:[#allocation5 + $0x30] sm:$0xff]  ;;  %s144_s12 = sshll.u32 %s318_s11, 4  ;;  %s145_s12 = int_to_ptr.vmem [resolvable:$true] %s144_s12 }
  0x29   :  { %v214_v10 = vpack.c.bf16 %v47_v9, %v46_v8  ;;  %v49_v12 = vld [vmem:[#allocation5 + $0x38] sm:$0xff]  ;;  %v50_v14 = vld [vmem:[#allocation5 + $0x40] sm:$0xff]  ;;  %v51_v15 = vld [vmem:[#allocation5 + $0x48] sm:$0xff]  ;;  %s283_s13 = scalar_lea.vmem %s145_s12, 64  ;;  %p288_p3 = scmp.lt.s32.totalorder %s145_s12, %s145_s12 }
  0x2a   :  { %209 = vmatpush3.bf16.msra.mxu0 %v208_v5  ;;  %v217_v13 = vpack.c.bf16 %v49_v12, %v48_v11  ;;  %v220_v16 = vpack.c.bf16 %v51_v15, %v50_v14  ;;  %v52_v17 = vld [vmem:[#allocation5 + $0x50] sm:$0xff]  ;;  %v53_v18 = vld [vmem:[#allocation5 + $0x58] sm:$0xff]  ;;  %v54_v20 = vld [vmem:[#allocation5 + $0x60] sm:$0xff]  ;;  %p284_p2 = scmp.ne.s32.totalorder %s145_s12, %s283_s13  ;;  %p289_p4 = scmp.lt.s32.totalorder %s283_s13, %s283_s13 }
  0x2b   :  { %210 = vmatprep.subr.bf16.mxu0 %v315_v0  ;;  %v223_v19 = vpack.c.bf16 %v53_v18, %v52_v17  ;;  %v55_v21 = vld [vmem:[#allocation5 + $0x68] sm:$0xff]  ;;  %v56_v23 = vld [vmem:[#allocation5 + $0x70] sm:$0xff]  ;;  %v57_v24 = vld [vmem:[#allocation5 + $0x78] sm:$0xff] }
  0x2c   :  { %v226_v22 = vpack.c.bf16 %v55_v21, %v54_v20  ;;  %v229_v25 = vpack.c.bf16 %v57_v24, %v56_v23  ;;  %v41_v26 = vld [vmem:[#allocation2] sm:$0xf]  ;;  %p290_p5 = por %p289_p4, %p288_p3 }
  0x2d   :  { %v154_v27 = vld [vmem:[%s387_s2] ss:$0 sm:$0xff] }
  0x2e   :  { %212 = vmatpush3.bf16.msra.mxu0 %v211_v7  ;;  %p291_p6 = pnand %p290_p5, %p284_p2 }
  0x2f   :  { %213 = vmatprep.subr.bf16.mxu0 %v315_v0 }
  0x32   :  { %215 = vmatpush3.bf16.msra.mxu0 %v214_v10 }
  0x33   :  { %216 = vmatprep.subr.bf16.mxu0 %v315_v0 }
  0x36   :  { %218 = vmatpush3.bf16.msra.mxu0 %v217_v13 }
  0x37   :  { %219 = vmatprep.subr.bf16.mxu0 %v315_v0 }
  0x3a   :  { %221 = vmatpush3.bf16.msra.mxu0 %v220_v16 }
  0x3b   :  { %222 = vmatprep.subr.bf16.mxu0 %v315_v0 }
  0x3e   :  { %224 = vmatpush3.bf16.msra.mxu0 %v223_v19 }
  0x3f   :  { %225 = vmatprep.subr.bf16.mxu0 %v315_v0 }
  0x42   :  { %227 = vmatpush3.bf16.msra.mxu0 %v226_v22 }
  0x43   :  { %228 = vmatprep.subr.bf16.mxu0 %v315_v0 }
  0x46   :  { %230 = vmatpush3.bf16.msra.mxu0 %v229_v25 }
  0x49   :  { %205 = vmatmul.mubr.f32.vlgmr.msra.gmra.mrb[0].mxu0 %v41_v26 }
 0x11c   :  { %v131_v28 = vpop.f32.mrb[0].mxu0 }
 0x11d   :  { %v132_v29 = vadd.f32 %v154_v27, %v131_v28  ;;  %v206_v30 = vpop.f32.mrb[1].mxu0 }
 0x11f   :  { %v135_v31 = vmax.f32 %v132_v29, 0.0 }
 0x121   :  { %v136_v32 = vadd.f32 %v135_v31, %v41_v26 }
 0x123   :  { %137 = vst [vmem:[#allocation7] sm:$0xf] %v136_v32 }
 0x124   :  { %294 = shalt.err (!%p291_p6)
}
 0x125   :  { %s295_s2 = scalar_lea.hbm %s388_s3, 64 }
 0x126   :  { %p296_p7 = scmp.ne.s32.totalorder %s388_s3, %s295_s2  ;;  %p299_p8 = scmp.lt.u32.totalorder %s295_s2, %s388_s3 }
 0x128   :  { %p301_p9 = pnand %p299_p8, %p296_p7 }
 0x12a   :  { %304 = shalt.err (!%p301_p9)
}
 0x12b   :  { %147 = dma.vmem_to_hbm [thread:$0]  %s145_s12, 64, %s388_s3, [#allocation4]  }
 0x12c   :  { %309 = dma.done.wait [#allocation4], 64  }
 0x12d   :  { %310 = vsyncadd [#allocation4], 4294967232 }
 0x12e   :  { %151 = vsyncpa [#allocation3], 1 }
 0x12f   :  { %152 = vsyncpa [#allocation6], 1 }
 0x130   :  { %153 = vsyncpa [#allocation4], 1 }

</bundles_post_ra>
